<compile_context>
chip_gen: v7x
topology: tpu7x:2x2x1
jax: 0.10.0
libtpu: 0.0.40
codegen_flags: <defaults>
</compile_context>

<pallas_src>
import functools

import jax
import jax.numpy as jnp
from jax.experimental import pallas as pl
from jax.experimental.pallas import tpu as pltpu


def _round_up(x, m):
    return ((x + m - 1) // m) * m


@functools.lru_cache(maxsize=1)
def _physical_vmem_bytes():
    """Physical per-core VMEM (generation-aware), with safe fallbacks."""
    try:
        return int(pltpu.get_tpu_info().vmem_capacity_bytes)
    except Exception:
        pass
    try:
        kind = jax.devices()[0].device_kind.lower()
        if "v7" in kind:
            return 64 * 1024 * 1024
    except Exception:
        pass
    return 128 * 1024 * 1024


# --------------------------------------------------------------------------- #
# Kernel
# --------------------------------------------------------------------------- #
def _critic_kernel(state_ref, action_ref,
                   w1s_ref, w1a_ref,        # W1 split at the state/action boundary
                   w23_ref,                 # (2, Hp, Hp): [w2, w3]
                   b123_ref,                # (3, 1, Hp): [b1, b2, b3] (f32)
                   w4_ref, b4_ref,
                   out_ref, *, out_via_reduce):
    cd = w1s_ref.dtype                      # MXU compute dtype (bf16 or f32)

    s = state_ref[...].astype(cd)
    a = action_ref[...].astype(cd)

    # Layer 1: split-W1 dots replace the unaligned feature-axis concat.
    h = (jnp.dot(s, w1s_ref[...], preferred_element_type=jnp.float32)
         + jnp.dot(a, w1a_ref[...], preferred_element_type=jnp.float32)
         + b123_ref[0])
    h = jnp.maximum(h, 0.0)

    # Layer 2 + ReLU
    h = jnp.dot(h.astype(cd), w23_ref[0],
                preferred_element_type=jnp.float32) + b123_ref[1]
    h = jnp.maximum(h, 0.0)

    # Layer 3 + ReLU
    h = jnp.dot(h.astype(cd), w23_ref[1],
                preferred_element_type=jnp.float32) + b123_ref[2]
    h = jnp.maximum(h, 0.0)

    # Layer 4 (no activation)
    if out_via_reduce:
        # out_dim == 1: VPU multiply + lane reduction (avoids an N=1 MXU dot).
        w4_row = w4_ref[...].astype(jnp.float32)            # (1, Hp), lane-dense
        out_ref[...] = jnp.sum(h * w4_row, axis=-1, keepdims=True) + b4_ref[...]
    else:
        out_ref[...] = (jnp.dot(h.astype(cd), w4_ref[...],
                                preferred_element_type=jnp.float32)
                        + b4_ref[...])


# --------------------------------------------------------------------------- #
# One-time parameter packing (keep OUT of the per-call path)
# --------------------------------------------------------------------------- #
def prepare_params(params, state_dim, action_dim, *,
                   compute_dtype=jnp.bfloat16, hidden_align=128, k_align=16):
    """Pad / split / stack / cast the Critic parameters exactly once.

    params: dict with w1..w4 of shape (in, out) f32 and b1..b4 of shape (1, out) f32.
    Zero-padding weight rows/cols is exact under linear + ReLU.
    """
    w1, w2, w3, w4 = params["w1"], params["w2"], params["w3"], params["w4"]
    b1, b2, b3, b4 = params["b1"], params["b2"], params["b3"], params["b4"]
    hidden = w2.shape[0]
    out_dim = w4.shape[1]
    assert w1.shape[0] == state_dim + action_dim

    hp = _round_up(max(hidden, hidden_align), hidden_align)   # lane-dense hidden
    sp = _round_up(state_dim, k_align)                        # sublane-aligned K
    ap = _round_up(action_dim, k_align)

    def pad2(x, rows, cols):
        return jnp.pad(x, ((0, rows - x.shape[0]), (0, cols - x.shape[1])))

    cd = compute_dtype
    w1s = pad2(w1[:state_dim, :], sp, hp).astype(cd)                    # (sp, Hp)
    w1a = pad2(w1[state_dim:, :], ap, hp).astype(cd)                    # (ap, Hp)
    w23 = jnp.stack([pad2(w2, hp, hp), pad2(w3, hp, hp)]).astype(cd)    # (2, Hp, Hp)
    b123 = jnp.stack([pad2(b1, 1, hp), pad2(b2, 1, hp),
                      pad2(b3, 1, hp)]).astype(jnp.float32)             # (3, 1, Hp)

    if out_dim == 1:
        w4p = pad2(w4, hp, 1).T.astype(cd)                              # (1, Hp)
    else:
        w4p = pad2(w4, hp, out_dim).astype(cd)                          # (Hp, out)
    b4p = b4.astype(jnp.float32)                                        # (1, out)

    return {"w1s": w1s, "w1a": w1a, "w23": w23, "b123": b123,
            "w4": w4p, "b4": b4p}


# --------------------------------------------------------------------------- #
# Forward
# --------------------------------------------------------------------------- #
@functools.partial(jax.jit, static_argnames=("block_batch",))
def critic_forward(state, action, packed, *, block_batch=256):
    batch = state.shape[0]
    w1s, w1a = packed["w1s"], packed["w1a"]
    w23, b123 = packed["w23"], packed["b123"]
    w4, b4 = packed["w4"], packed["b4"]

    sp, hp = w1s.shape
    ap = w1a.shape[0]
    out_dim = b4.shape[1]
    out_via_reduce = (out_dim == 1)

    # Pad activation feature dims to match the pre-padded weights (cheap; exact).
    state_p = jnp.pad(state, ((0, 0), (0, sp - state.shape[1])))
    action_p = jnp.pad(action, ((0, 0), (0, ap - action.shape[1])))

    # ---- generation-aware batch tile -------------------------------------- #
    phys_vmem = _physical_vmem_bytes()
    small_vmem = phys_vmem <= 64 * 1024 * 1024          # v7x-class core

    cap = block_batch
    if small_vmem:
        cap = min(cap, 512)
    elif batch >= 1024:
        cap = max(cap, 1024)                            # 128 MiB VMEM: bigger tiles
    tb = min(cap, batch)
    if small_vmem and batch > 16:
        # >=2 grid steps so ("parallel",) shards across the two TensorCores.
        tb = min(tb, _round_up(pl.cdiv(batch, 2), 16))
    if tb < batch:
        tb = max(16, _round_up(tb, 16))
    grid = (pl.cdiv(batch, tb),)

    # ---- VMEM limit from the actual footprint ------------------------------ #
    in_itemsize = jnp.dtype(state_p.dtype).itemsize
    weight_bytes = sum(int(jnp.dtype(a.dtype).itemsize) * a.size
                       for a in (w1s, w1a, w23, b123, w4, b4))
    act_tile_bytes = tb * (sp + ap) * in_itemsize + tb * out_dim * 4
    scratch_bytes = 4 * tb * hp * 4                     # f32 intermediates headroom
    footprint = weight_bytes + 2 * act_tile_bytes + scratch_bytes + (2 << 20)
    budget = int(phys_vmem * 0.75)                      # ~48 MiB v7x, ~96 MiB v5e/v6e
    vmem_limit = int(max(16 << 20, min(footprint, budget)))

    # ---- advisory cost estimate -------------------------------------------- #
    flops = 2 * batch * (sp * hp + ap * hp + 2 * hp * hp + hp * out_dim)
    bytes_accessed = (weight_bytes
                      + batch * (sp + ap) * in_itemsize
                      + batch * out_dim * 4)
    cost = pl.CostEstimate(flops=flops, transcendentals=0,
                           bytes_accessed=bytes_accessed)

    # ---- specs -------------------------------------------------------------- #
    def batch_map(i):
        return (i, 0)

    def const2_map(i):
        return (0, 0)

    def const3_map(i):
        return (0, 0, 0)

    resident = pl.Buffered(1)    # constant block index -> single-buffered, VMEM-resident

    in_specs = [
        pl.BlockSpec((tb, sp), batch_map),
        pl.BlockSpec((tb, ap), batch_map),
        pl.BlockSpec(w1s.shape, const2_map, pipeline_mode=resident),
        pl.BlockSpec(w1a.shape, const2_map, pipeline_mode=resident),
        pl.BlockSpec(w23.shape, const3_map, pipeline_mode=resident),
        pl.BlockSpec(b123.shape, const3_map, pipeline_mode=resident),
        pl.BlockSpec(w4.shape, const2_map, pipeline_mode=resident),
        pl.BlockSpec(b4.shape, const2_map, pipeline_mode=resident),
    ]
    out_spec = pl.BlockSpec((tb, out_dim), batch_map)

    kernel = functools.partial(_critic_kernel, out_via_reduce=out_via_reduce)

    return pl.pallas_call(
        kernel,
        out_shape=jax.ShapeDtypeStruct((batch, out_dim), jnp.float32),
        grid=grid,
        in_specs=in_specs,
        out_specs=out_spec,
        compiler_params=pltpu.CompilerParams(
            dimension_semantics=("parallel",),          # megacore shard on v7x
            vmem_limit_bytes=vmem_limit,
        ),
        cost_estimate=cost,
    )(state_p, action_p, w1s, w1a, w23, b123, w4, b4)


# --------------------------------------------------------------------------- #
# Reference + init (for the self-test)
# --------------------------------------------------------------------------- #
def init_params(key, input_size, hidden_size, output_size):
    """Deterministic init mirroring nn.Linear shapes (weights stored (in, out))."""
    sizes = [(input_size, hidden_size),
             (hidden_size, hidden_size),
             (hidden_size, hidden_size),
             (hidden_size, output_size)]
    params = {}
    for i, (fan_in, fan_out) in enumerate(sizes, start=1):
        key, wk, bk = jax.random.split(key, 3)
        bound = 1.0 / jnp.sqrt(fan_in)
        params[f"w{i}"] = jax.random.uniform(
            wk, (fan_in, fan_out), jnp.float32, -bound, bound)
        params[f"b{i}"] = jax.random.uniform(
            bk, (1, fan_out), jnp.float32, -bound, bound)
    return params


def critic_reference(state, action, params):
    x = jnp.concatenate([state, action], axis=1)
    h = jnp.maximum(x @ params["w1"] + params["b1"], 0.0)
    h = jnp.maximum(h @ params["w2"] + params["b2"], 0.0)
    h = jnp.maximum(h @ params["w3"] + params["b3"], 0.0)
    return h @ params["w4"] + params["b4"]


if __name__ == "__main__":
    # Small, module-consistent shapes.
    batch = 8
    state_dim, action_dim = 24, 8            # input_size = 32
    input_size = state_dim + action_dim
    hidden_size = 32
    output_size = 1

    key = jax.random.PRNGKey(0)
    key, ks, ka, kp = jax.random.split(key, 4)
    state = jax.random.normal(ks, (batch, state_dim), jnp.float32)
    action = jax.random.normal(ka, (batch, action_dim), jnp.float32)
    params = init_params(kp, input_size, hidden_size, output_size)

    ref = critic_reference(state, action, params)

    # Exact f32 compute path.
    packed_f32 = jax.block_until_ready(
        prepare_params(params, state_dim, action_dim, compute_dtype=jnp.float32))
    out = jax.block_until_ready(critic_forward(state, action, packed_f32))
    assert out.shape == (batch, output_size)
    assert jnp.allclose(out, ref, atol=1e-5, rtol=1e-5), "f32 mismatch vs reference"

    # Default bf16 MXU compute path (f32 accumulate) -- preferred on v5e/v6e/v7x.
    packed_bf16 = jax.block_until_ready(
        prepare_params(params, state_dim, action_dim))
    out_bf16 = jax.block_until_ready(critic_forward(state, action, packed_bf16))
    assert out_bf16.shape == (batch, output_size)
    assert jnp.allclose(out_bf16, ref, atol=1e-1, rtol=1e-1), "bf16 mismatch vs reference"

    print("KERNEL_OK")
</pallas_src>

<mosaic_0001>
module attributes {stable_mosaic.version = 11 : i64} {
  func.func @_critic_kernel(%arg0: i32, %arg1: memref<8x32xf32, #tpu.memory_space<vmem>>, %arg2: memref<8x16xf32, #tpu.memory_space<vmem>>, %arg3: memref<32x128xf32, #tpu.memory_space<vmem>>, %arg4: memref<16x128xf32, #tpu.memory_space<vmem>>, %arg5: memref<2x128x128xf32, #tpu.memory_space<vmem>>, %arg6: memref<3x1x128xf32, #tpu.memory_space<vmem>>, %arg7: memref<1x128xf32, #tpu.memory_space<vmem>>, %arg8: memref<1x1xf32, #tpu.memory_space<vmem>>, %arg9: memref<8x1xf32, #tpu.memory_space<vmem>>) attributes {dimension_semantics = [#tpu.dimension_semantics<parallel>], iteration_bounds = array<i64: 1>, scalar_prefetch = 0 : i64, scratch_operands = 0 : i64, tpu.core_type = #tpu.core_type<tc>, window_params = [{transform_indices = @transform_0, window_bounds = array<i64: 8, 32>}, {transform_indices = @transform_1, window_bounds = array<i64: 8, 16>}, {pipeline_mode = #tpu.pipeline_mode<synchronous>, transform_indices = @transform_2, window_bounds = array<i64: 32, 128>}, {pipeline_mode = #tpu.pipeline_mode<synchronous>, transform_indices = @transform_3, window_bounds = array<i64: 16, 128>}, {pipeline_mode = #tpu.pipeline_mode<synchronous>, transform_indices = @transform_4, window_bounds = array<i64: 2, 128, 128>}, {pipeline_mode = #tpu.pipeline_mode<synchronous>, transform_indices = @transform_5, window_bounds = array<i64: 3, 1, 128>}, {pipeline_mode = #tpu.pipeline_mode<synchronous>, transform_indices = @transform_6, window_bounds = array<i64: 1, 128>}, {pipeline_mode = #tpu.pipeline_mode<synchronous>, transform_indices = @transform_7, window_bounds = array<i64: 1, 1>}, {transform_indices = @transform_8, window_bounds = array<i64: 8, 1>}]} {
    %c0 = arith.constant 0 : index
    %c0_0 = arith.constant 0 : index
    %0 = vector.load %arg1[%c0, %c0_0] : memref<8x32xf32, #tpu.memory_space<vmem>>, vector<8x32xf32>
    %c0_1 = arith.constant 0 : index
    %c0_2 = arith.constant 0 : index
    %1 = vector.load %arg2[%c0_1, %c0_2] : memref<8x16xf32, #tpu.memory_space<vmem>>, vector<8x16xf32>
    %c0_3 = arith.constant 0 : index
    %c0_4 = arith.constant 0 : index
    %2 = vector.load %arg3[%c0_3, %c0_4] : memref<32x128xf32, #tpu.memory_space<vmem>>, vector<32x128xf32>
    %cst = arith.constant dense<0.000000e+00> : vector<8x128xf32>
    %3 = tpu.matmul %0, %2, %cst {dimension_numbers = #tpu.dot_dimension_numbers<[1], [0], [0], [1], [0, 0, 1, 1], [], []>} : vector<8x32xf32>, vector<32x128xf32>, vector<8x128xf32> -> vector<8x128xf32>
    %c0_5 = arith.constant 0 : index
    %c0_6 = arith.constant 0 : index
    %4 = vector.load %arg4[%c0_5, %c0_6] : memref<16x128xf32, #tpu.memory_space<vmem>>, vector<16x128xf32>
    %cst_7 = arith.constant dense<0.000000e+00> : vector<8x128xf32>
    %5 = tpu.matmul %1, %4, %cst_7 {dimension_numbers = #tpu.dot_dimension_numbers<[1], [0], [0], [1], [0, 0, 1, 1], [], []>} : vector<8x16xf32>, vector<16x128xf32>, vector<8x128xf32> -> vector<8x128xf32>
    %6 = arith.addf %3, %5 : vector<8x128xf32>
    %c0_8 = arith.constant 0 : index
    %c0_9 = arith.constant 0 : index
    %c0_10 = arith.constant 0 : index
    %7 = vector.load %arg6[%c0_8, %c0_9, %c0_10] : memref<3x1x128xf32, #tpu.memory_space<vmem>>, vector<1x1x128xf32>
    %8 = vector.shape_cast %7 : vector<1x1x128xf32> to vector<1x128xf32>
    %9 = vector.broadcast %8 : vector<1x128xf32> to vector<8x128xf32>
    %10 = arith.addf %6, %9 : vector<8x128xf32>
    %cst_11 = arith.constant 0.000000e+00 : f32
    %11 = vector.broadcast %cst_11 : f32 to vector<8x128xf32>
    %12 = arith.maximumf %10, %11 : vector<8x128xf32>
    %c0_12 = arith.constant 0 : index
    %c0_13 = arith.constant 0 : index
    %c0_14 = arith.constant 0 : index
    %13 = vector.load %arg5[%c0_12, %c0_13, %c0_14] : memref<2x128x128xf32, #tpu.memory_space<vmem>>, vector<1x128x128xf32>
    %14 = vector.shape_cast %13 : vector<1x128x128xf32> to vector<128x128xf32>
    %cst_15 = arith.constant dense<0.000000e+00> : vector<8x128xf32>
    %15 = tpu.matmul %12, %14, %cst_15 {dimension_numbers = #tpu.dot_dimension_numbers<[1], [0], [0], [1], [0, 0, 1, 1], [], []>} : vector<8x128xf32>, vector<128x128xf32>, vector<8x128xf32> -> vector<8x128xf32>
    %c1 = arith.constant 1 : index
    %c0_16 = arith.constant 0 : index
    %c0_17 = arith.constant 0 : index
    %16 = vector.load %arg6[%c1, %c0_16, %c0_17] : memref<3x1x128xf32, #tpu.memory_space<vmem>>, vector<1x1x128xf32>
    %17 = vector.shape_cast %16 : vector<1x1x128xf32> to vector<1x128xf32>
    %18 = vector.broadcast %17 : vector<1x128xf32> to vector<8x128xf32>
    %19 = arith.addf %15, %18 : vector<8x128xf32>
    %cst_18 = arith.constant 0.000000e+00 : f32
    %20 = vector.broadcast %cst_18 : f32 to vector<8x128xf32>
    %21 = arith.maximumf %19, %20 : vector<8x128xf32>
    %c1_19 = arith.constant 1 : index
    %c0_20 = arith.constant 0 : index
    %c0_21 = arith.constant 0 : index
    %22 = vector.load %arg5[%c1_19, %c0_20, %c0_21] : memref<2x128x128xf32, #tpu.memory_space<vmem>>, vector<1x128x128xf32>
    %23 = vector.shape_cast %22 : vector<1x128x128xf32> to vector<128x128xf32>
    %cst_22 = arith.constant dense<0.000000e+00> : vector<8x128xf32>
    %24 = tpu.matmul %21, %23, %cst_22 {dimension_numbers = #tpu.dot_dimension_numbers<[1], [0], [0], [1], [0, 0, 1, 1], [], []>} : vector<8x128xf32>, vector<128x128xf32>, vector<8x128xf32> -> vector<8x128xf32>
    %c2 = arith.constant 2 : index
    %c0_23 = arith.constant 0 : index
    %c0_24 = arith.constant 0 : index
    %25 = vector.load %arg6[%c2, %c0_23, %c0_24] : memref<3x1x128xf32, #tpu.memory_space<vmem>>, vector<1x1x128xf32>
    %26 = vector.shape_cast %25 : vector<1x1x128xf32> to vector<1x128xf32>
    %27 = vector.broadcast %26 : vector<1x128xf32> to vector<8x128xf32>
    %28 = arith.addf %24, %27 : vector<8x128xf32>
    %cst_25 = arith.constant 0.000000e+00 : f32
    %29 = vector.broadcast %cst_25 : f32 to vector<8x128xf32>
    %30 = arith.maximumf %28, %29 : vector<8x128xf32>
    %c0_26 = arith.constant 0 : index
    %c0_27 = arith.constant 0 : index
    %31 = vector.load %arg7[%c0_26, %c0_27] : memref<1x128xf32, #tpu.memory_space<vmem>>, vector<1x128xf32>
    %32 = vector.broadcast %31 : vector<1x128xf32> to vector<8x128xf32>
    %33 = arith.mulf %30, %32 : vector<8x128xf32>
    %cst_28 = arith.constant dense<0.000000e+00> : vector<8xf32>
    %34 = vector.multi_reduction <add>, %33, %cst_28 [1] : vector<8x128xf32> to vector<8xf32>
    %35 = vector.shape_cast %34 : vector<8xf32> to vector<8x1xf32>
    %c0_29 = arith.constant 0 : index
    %c0_30 = arith.constant 0 : index
    %36 = vector.load %arg8[%c0_29, %c0_30] : memref<1x1xf32, #tpu.memory_space<vmem>>, vector<1x1xf32>
    %37 = vector.broadcast %36 : vector<1x1xf32> to vector<8x1xf32>
    %38 = arith.addf %35, %37 : vector<8x1xf32>
    %c0_31 = arith.constant 0 : index
    %c0_32 = arith.constant 0 : index
    %39 = vector.load %arg9[%c0_31, %c0_32] : memref<8x1xf32, #tpu.memory_space<vmem>>, vector<8x1xf32>
    tpu.vector_store %arg9[%c0_31, %c0_32], %38 {strides = array<i32>} : memref<8x1xf32, #tpu.memory_space<vmem>>, vector<8x1xf32>,
    return
  }
  func.func @transform_0(%arg0: i32) -> (i32, i32) {
    %c0_i32 = arith.constant 0 : i32
    %c0_i32_0 = arith.constant 0 : i32
    return %arg0, %c0_i32 : i32, i32
  }
  func.func @transform_1(%arg0: i32) -> (i32, i32) {
    %c0_i32 = arith.constant 0 : i32
    %c0_i32_0 = arith.constant 0 : i32
    return %arg0, %c0_i32 : i32, i32
  }
  func.func @transform_2(%arg0: i32) -> (i32, i32) {
    %c0_i32 = arith.constant 0 : i32
    %c0_i32_0 = arith.constant 0 : i32
    %c0_i32_1 = arith.constant 0 : i32
    return %c0_i32, %c0_i32_0 : i32, i32
  }
  func.func @transform_3(%arg0: i32) -> (i32, i32) {
    %c0_i32 = arith.constant 0 : i32
    %c0_i32_0 = arith.constant 0 : i32
    %c0_i32_1 = arith.constant 0 : i32
    return %c0_i32, %c0_i32_0 : i32, i32
  }
  func.func @transform_4(%arg0: i32) -> (i32, i32, i32) {
    %c0_i32 = arith.constant 0 : i32
    %c0_i32_0 = arith.constant 0 : i32
    %c0_i32_1 = arith.constant 0 : i32
    %c0_i32_2 = arith.constant 0 : i32
    return %c0_i32, %c0_i32_0, %c0_i32_1 : i32, i32, i32
  }
  func.func @transform_5(%arg0: i32) -> (i32, i32, i32) {
    %c0_i32 = arith.constant 0 : i32
    %c0_i32_0 = arith.constant 0 : i32
    %c0_i32_1 = arith.constant 0 : i32
    %c0_i32_2 = arith.constant 0 : i32
    return %c0_i32, %c0_i32_0, %c0_i32_1 : i32, i32, i32
  }
  func.func @transform_6(%arg0: i32) -> (i32, i32) {
    %c0_i32 = arith.constant 0 : i32
    %c0_i32_0 = arith.constant 0 : i32
    %c0_i32_1 = arith.constant 0 : i32
    return %c0_i32, %c0_i32_0 : i32, i32
  }
  func.func @transform_7(%arg0: i32) -> (i32, i32) {
    %c0_i32 = arith.constant 0 : i32
    %c0_i32_0 = arith.constant 0 : i32
    %c0_i32_1 = arith.constant 0 : i32
    return %c0_i32, %c0_i32_0 : i32, i32
  }
  func.func @transform_8(%arg0: i32) -> (i32, i32) {
    %c0_i32 = arith.constant 0 : i32
    %c0_i32_0 = arith.constant 0 : i32
    return %arg0, %c0_i32 : i32, i32
  }
}

</mosaic_0001>

<bundles_post_ra>
// kernel: critic_forward.1
= control target key start
LH: loop header
LB: loop body
LE: loop exit
PB: predicated region body
PF: predicated region fallthrough
CT: control target
= control target key end

     0   :  { %s780_s0 = inlined_call_operand.vmem [shape: f32[8,32], index: 0, kind: input, shape index: {}]   ;;  %s781_s1 = inlined_call_operand.vmem [shape: f32[8,16], index: 1, kind: input, shape index: {}]   ;;  %s782_s2 = inlined_call_operand.vmem [shape: f32[32,128], index: 2, kind: input, shape index: {}]   ;;  %s783_s3 = inlined_call_operand.vmem [shape: f32[16,128], index: 3, kind: input, shape index: {}]   ;;  %s784_s4 = inlined_call_operand.hbm [shape: f32[2,128,128], index: 4, kind: input, shape index: {}]   ;;  %s785_s5 = inlined_call_operand.vmem [shape: f32[3,1,128], index: 5, kind: input, shape index: {}]   ;;  %s786_s6 = inlined_call_operand.vmem [shape: f32[1,128], index: 6, kind: input, shape index: {}]   ;;  %s787_s7 = inlined_call_operand.<no memory space> [shape: f32[1,1], index: 7, kind: input, shape index: {}]   ;;  %s788_s8 = inlined_call_operand.vmem [shape: f32[8,1], index: 8, kind: output, shape index: {}]  }
   0x1   :  { %v13_v0 = vstv %s787_s7 }
   0x2   :  { %14 = vst [vmem:[#allocation2] sm:$0x1] %v13_v0 }
   0x3   :  { %15 = vsyncpa [#allocation4], 0  ;;  %s652_s29 = smov [#allocation3]   ;;  %s628_s11 = scalar_lea.hbm %s784_s4, 4096 }
   0x4   :  { %s29_s30 = sshll.u32 %s652_s29, 4  ;;  %p629_p0 = scmp.ne.s32.totalorder %s784_s4, %s628_s11  ;;  %s30_s30 = int_to_ptr.vmem [resolvable:$true] %s29_s30 }
   0x5   :  { %p632_p1 = scmp.lt.u32.totalorder %s628_s11, %s784_s4 }
   0x7   :  { %p634_p2 = pnand %p632_p1, %p629_p0 }
   0x9   :  { %637 = shalt.err (!%p634_p2)
}
   0xa   :  { %s638_s7 = scalar_lea.vmem %s30_s30, 4096  ;;  %p643_p4 = scmp.lt.s32.totalorder %s30_s30, %s30_s30 }
   0xb   :  { %p639_p3 = scmp.ne.s32.totalorder %s30_s30, %s638_s7  ;;  %p644_p5 = scmp.lt.s32.totalorder %s638_s7, %s638_s7 }
   0xd   :  { %p645_p6 = por %p644_p5, %p643_p4 }
   0xf   :  { %p646_p7 = pnand %p645_p6, %p639_p3 }
  0x11   :  { %649 = shalt.err (!%p646_p7)
}
  0x12   :  { %s653_s16 = smov 128   ;;  %s654_s17 = smov 8  }
  0x13   :  { %35 = dma.hbm_to_vmem [thread:$0]  %s784_s4, 4096, %s30_s30, [#allocation4], %s653_s16, %s653_s16, %s654_s17  }
  0x14   :  { %650 = dma.done.wait [#allocation4], 4096  }
  0x15   :  { %651 = vsyncadd [#allocation4], 4294963200  ;;  %v655_v1 = vmov 0.0|0.0   ;;  %vm656_vm0 = vmmov 0   ;;  %v657_v2 = vmov 0.0   ;;  %v47_v3 = vld [vmem:[%s782_s2] sm:$0xff] }
  0x16   :  { %568 = vmatprep.subr.bf16.mxu1 %v655_v1  ;;  %565 = vmatprep.subr.bf16.mxu0 %v655_v1  ;;  %v48_v4 = vld [vmem:[%s782_s2 + $0x8] sm:$0xff]  ;;  %v51_v5 = vld [vmem:[%s783_s3] sm:$0xff]  ;;  %v49_v8 = vld [vmem:[%s782_s2 + $0x10] sm:$0xff]  ;;  %vm53_vm1 = vcmask 130048   ;;  %vm127_vm2 = vcmask 261120   ;;  %vm419_vm3 = vcmask 7168  }
  0x17   :  { %481 = vmatprep.mubr.msk.f32.mxu0 %vm656_vm0, %v657_v2  ;;  %492 = vmatprep.mubr.msk.f32.mxu1 %vm656_vm0, %v657_v2  ;;  %v569_v6 = vpack.c.bf16 %v48_v4, %v47_v3  ;;  %v52_v7 = vld [vmem:[%s783_s3 + $0x8] sm:$0xff]  ;;  %v50_v9 = vld [vmem:[%s782_s2 + $0x18] sm:$0xff]  ;;  %v46_v14 = vld [vmem:[%s781_s1] sm:$0xff] }
  0x18   :  { %v566_v10 = vpack.c.bf16 %v52_v7, %v51_v5  ;;  %v210_v11 = vld [vmem:[#allocation3] sm:$0xff]  ;;  %v572_v12 = vpack.c.bf16 %v50_v9, %v49_v8  ;;  %v211_v13 = vld [vmem:[#allocation3 + $0x8] sm:$0xff]  ;;  %v212_v16 = vld [vmem:[#allocation3 + $0x10] sm:$0xff] }
  0x19   :  { %570 = vmatpush3.bf16.msra.mxu1 %v569_v6  ;;  %v575_v15 = vpack.c.bf16 %v211_v13, %v210_v11  ;;  %v213_v17 = vld [vmem:[#allocation3 + $0x18] sm:$0xff]  ;;  %v214_v20 = vld [vmem:[#allocation3 + $0x20] sm:$0xff]  ;;  %v215_v21 = vld [vmem:[#allocation3 + $0x28] sm:$0xff] }
  0x1a   :  { %567 = vmatpush3.bf16.msra.mxu0 %v566_v10  ;;  %571 = vmatprep.subr.bf16.mxu1 %v655_v1  ;;  %v45_v18 = vld [vmem:[%s780_s0] sm:$0xff]  ;;  %v578_v19 = vpack.c.bf16 %v213_v17, %v212_v16  ;;  %v581_v22 = vpack.c.bf16 %v215_v21, %v214_v20  ;;  %v216_v23 = vld [vmem:[#allocation3 + $0x30] sm:$0xff]  ;;  %v219_v27 = vld [vmem:[#allocation3 + $0x48] sm:$0xff] }
  0x1b   :  { %574 = vmatprep.subr.bf16.mxu0 %v655_v1  ;;  %v217_v24 = vld [vmem:[#allocation3 + $0x38] sm:$0xff]  ;;  %v218_v26 = vld [vmem:[#allocation3 + $0x40] sm:$0xff]  ;;  %v220_v29 = vld [vmem:[#allocation3 + $0x50] sm:$0xff] }
  0x1c   :  { %v584_v25 = vpack.c.bf16 %v217_v24, %v216_v23  ;;  %v587_v28 = vpack.c.bf16 %v219_v27, %v218_v26  ;;  %v221_v30 = vld [vmem:[#allocation3 + $0x58] sm:$0xff]  ;;  %v222_v32 = vld [vmem:[#allocation3 + $0x60] sm:$0xff]  ;;  %v223_v33 = vld [vmem:[#allocation3 + $0x68] sm:$0xff] }
  0x1d   :  { %573 = vmatpush3.bf16.msra.mxu1 %v572_v12  ;;  %482 = vmatmul.mubr.msk.f32.vlgmr.msra.gmra.mrb[0].mxu0 %vm53_vm1, %v46_v14  ;;  %v590_v31 = vpack.c.bf16 %v221_v30, %v220_v29  ;;  %v593_v34 = vpack.c.bf16 %v223_v33, %v222_v32  ;;  %v224_v35 = vld [vmem:[#allocation3 + $0x70] sm:$0xff]  ;;  %v225_v36 = vld [vmem:[#allocation3 + $0x78] sm:$0xff]  ;;  %v306_v38 = vld [vmem:[#allocation3 + $0x80] sm:$0xff] }
  0x1e   :  { %576 = vmatpush3.bf16.msra.mxu0 %v575_v15  ;;  %527 = vmatprep.mubr.msk.f32.mxu0 %vm656_vm0, %v657_v2  ;;  %v596_v37 = vpack.c.bf16 %v225_v36, %v224_v35  ;;  %v307_v39 = vld [vmem:[#allocation3 + $0x88] sm:$0xff]  ;;  %v308_v40 = vld [vmem:[#allocation3 + $0x90] sm:$0xff]  ;;  %v309_v42 = vld [vmem:[#allocation3 + $0x98] sm:$0xff] }
  0x1f   :  { %577 = vmatprep.subr.bf16.mxu0 %v655_v1  ;;  %598 = vmatprep.subr.bf16.mxu1 %v655_v1  ;;  %v599_v41 = vpack.c.bf16 %v307_v39, %v306_v38  ;;  %v602_v43 = vpack.c.bf16 %v309_v42, %v308_v40  ;;  %v310_v44 = vld [vmem:[#allocation3 + $0xa0] sm:$0xff]  ;;  %v311_v45 = vld [vmem:[#allocation3 + $0xa8] sm:$0xff]  ;;  %v312_v47 = vld [vmem:[#allocation3 + $0xb0] sm:$0xff] }
  0x20   :  { %493 = vmatmul.mubr.msk.f32.vlgmr.msra.gmra.mrb[0].mxu1 %vm127_vm2, %v45_v18  ;;  %v605_v46 = vpack.c.bf16 %v311_v45, %v310_v44  ;;  %v313_v48 = vld [vmem:[#allocation3 + $0xb8] sm:$0xff]  ;;  %v314_v50 = vld [vmem:[#allocation3 + $0xc0] sm:$0xff]  ;;  %v315_v51 = vld [vmem:[#allocation3 + $0xc8] sm:$0xff] }
  0x21   :  { %562 = vmatprep.mubr.msk.f32.mxu1 %vm656_vm0, %v657_v2  ;;  %600 = vmatpush3.bf16.msra.mxu1 %v599_v41  ;;  %v608_v49 = vpack.c.bf16 %v313_v48, %v312_v47  ;;  %v611_v52 = vpack.c.bf16 %v315_v51, %v314_v50  ;;  %v316_v53 = vld [vmem:[#allocation3 + $0xd0] sm:$0xff]  ;;  %v317_v54 = vld [vmem:[#allocation3 + $0xd8] sm:$0xff]  ;;  %v318_v56 = vld [vmem:[#allocation3 + $0xe0] sm:$0xff] }
  0x22   :  { %579 = vmatpush3.bf16.msra.mxu0 %v578_v19  ;;  %601 = vmatprep.subr.bf16.mxu1 %v655_v1  ;;  %v614_v55 = vpack.c.bf16 %v317_v54, %v316_v53  ;;  %v319_v57 = vld [vmem:[#allocation3 + $0xe8] sm:$0xff]  ;;  %v428_v62 = vld [vmem:[%s785_s5] ss:$0 sm:$0xff]  ;;  %v320_v4 = vld [vmem:[#allocation3 + $0xf0] sm:$0xff] }
  0x23   :  { %580 = vmatprep.subr.bf16.mxu0 %v655_v1  ;;  %v617_v58 = vpack.c.bf16 %v319_v57, %v318_v56  ;;  %v321_v5 = vld [vmem:[#allocation3 + $0xf8] sm:$0xff]  ;;  %v432_v11 = vld [vmem:[%s785_s5 + $0x2] ss:$0 sm:$0xff] }
  0x24   :  { %v620_v6 = vpack.c.bf16 %v321_v5, %v320_v4  ;;  %v433_v15 = vld [vmem:[%s786_s6] ss:$0 sm:$0xff] }
  0x25   :  { %603 = vmatpush3.bf16.msra.mxu1 %v602_v43  ;;  %v434_v18 = vld [vmem:[#allocation2] ss:$0 sm:$0xff] }
  0x26   :  { %582 = vmatpush3.bf16.msra.mxu0 %v581_v22  ;;  %604 = vmatprep.subr.bf16.mxu1 %v655_v1 }
  0x27   :  { %583 = vmatprep.subr.bf16.mxu0 %v655_v1 }
  0x29   :  { %606 = vmatpush3.bf16.msra.mxu1 %v605_v46 }
  0x2a   :  { %585 = vmatpush3.bf16.msra.mxu0 %v584_v25  ;;  %607 = vmatprep.subr.bf16.mxu1 %v655_v1 }
  0x2b   :  { %586 = vmatprep.subr.bf16.mxu0 %v655_v1 }
  0x2d   :  { %609 = vmatpush3.bf16.msra.mxu1 %v608_v49 }
  0x2e   :  { %588 = vmatpush3.bf16.msra.mxu0 %v587_v28  ;;  %610 = vmatprep.subr.bf16.mxu1 %v655_v1 }
  0x2f   :  { %589 = vmatprep.subr.bf16.mxu0 %v655_v1 }
  0x31   :  { %612 = vmatpush3.bf16.msra.mxu1 %v611_v52 }
  0x32   :  { %591 = vmatpush3.bf16.msra.mxu0 %v590_v31  ;;  %613 = vmatprep.subr.bf16.mxu1 %v655_v1 }
  0x33   :  { %592 = vmatprep.subr.bf16.mxu0 %v655_v1 }
  0x35   :  { %615 = vmatpush3.bf16.msra.mxu1 %v614_v55 }
  0x36   :  { %594 = vmatpush3.bf16.msra.mxu0 %v593_v34  ;;  %616 = vmatprep.subr.bf16.mxu1 %v655_v1 }
  0x37   :  { %595 = vmatprep.subr.bf16.mxu0 %v655_v1 }
  0x39   :  { %618 = vmatpush3.bf16.msra.mxu1 %v617_v58 }
  0x3a   :  { %597 = vmatpush3.bf16.msra.mxu0 %v596_v37  ;;  %619 = vmatprep.subr.bf16.mxu1 %v655_v1  ;;  %v430_v1 = vld [vmem:[%s785_s5 + $0x1] ss:$0 sm:$0xff] }
  0x3d   :  { %621 = vmatpush3.bf16.msra.mxu1 %v620_v6 }
  0xf0   :  { %v123_v59 = vpop.f32.mrb[0].mxu0 }
  0xf1   :  { %v483_v60 = vpop.f32.mrb[1].mxu0 }
  0xf3   :  { %v197_v61 = vpop.f32.mrb[0].mxu1 }
  0xf4   :  { %v198_v63 = vadd.f32 %v197_v61, %v123_v59  ;;  %v494_v0 = vpop.f32.mrb[1].mxu1 }
  0xf6   :  { %v208_v2 = vadd.f32 %v428_v62, %v198_v63 }
  0xf8   :  { %v209_v3 = vmax.f32 %v208_v2, 0.0 }
  0xfa   :  { %528 = vmatmul.mubr.f32.vlgmr.msra.gmra.mrb[2].mxu0 %v209_v3 }
 0x1cd   :  { %v300_v7 = vpop.f32.mrb[2].mxu0 }
 0x1ce   :  { %v301_v8 = vadd.f32 %v430_v1, %v300_v7  ;;  %v529_v9 = vpop.f32.mrb[3].mxu0 }
 0x1d0   :  { %v304_v10 = vmax.f32 %v301_v8, 0.0 }
 0x1d2   :  { %563 = vmatmul.mubr.f32.vlgmr.msra.gmra.mrb[2].mxu1 %v304_v10 }
 0x2a5   :  { %v396_v12 = vpop.f32.mrb[2].mxu1 }
 0x2a6   :  { %v397_v13 = vadd.f32 %v432_v11, %v396_v12  ;;  %v564_v14 = vpop.f32.mrb[3].mxu1 }
 0x2a8   :  { %v400_v16 = vmax.f32 %v397_v13, 0.0 }
 0x2aa   :  { %v408_v17 = vmul.f32 %v433_v15, %v400_v16 }
 0x2ac   :  { %409 = vadd.xlane.f32.xlu0 %v408_v17 }
 0x339   :  { %v410_v19 = vpop.xlane.xlu0 %409 }
 0x33a   :  { %v418_v20 = vadd.f32 %v434_v18, %v410_v19 }
 0x33c   :  { %420 = vst.msk [vmem:[%s788_s8] sm:$0xff] %vm419_vm3, %v418_v20 }
 0x33d   :  { %425 = vsyncpa [#allocation4], 1 }

</bundles_post_ra>
